<compile_context>
chip_gen: v7x
topology: tpu7x:2x2x1
jax: 0.10.0
libtpu: 0.0.40
codegen_flags: <defaults>
</compile_context>

<pallas_src>
import functools

import jax
import jax.numpy as jnp
from jax import lax
from jax.experimental import pallas as pl
from jax.experimental.pallas import tpu as pltpu


def _partial_product(x_ref, w_ref):
    # x_ref: (tm, tk), w_ref: (tn, tk)  ->  (tm, tn), contracting along K.
    # Keeps the weight in its (N, K) HBM layout (no wrapper-side transpose).
    return lax.dot_general(
        x_ref[...],
        w_ref[...],
        dimension_numbers=(((1,), (1,)), ((), ())),
        preferred_element_type=jnp.float32,
    )


def _kernel_f32_out(x_ref, w_ref, b_ref, o_ref):
    """relu(x @ W.T + b) accumulated directly in the resident f32 out tile."""
    k = pl.program_id(2)
    part = _partial_product(x_ref, w_ref)

    @pl.when(k == 0)
    def _():  # fold bias into the accumulator init (no zero-fill pass)
        o_ref[...] = b_ref[...].astype(jnp.float32) + part

    @pl.when(k > 0)
    def _():
        o_ref[...] += part

    @pl.when(k == pl.num_programs(2) - 1)
    def _():  # fused ReLU epilogue, single HBM writeback of the tile
        o_ref[...] = jnp.maximum(o_ref[...], 0.0)


def _kernel_acc_out(x_ref, w_ref, b_ref, o_ref, acc_ref):
    """Same computation, f32 scratch accumulator for sub-f32 output dtypes."""
    k = pl.program_id(2)
    part = _partial_product(x_ref, w_ref)

    @pl.when(k == 0)
    def _():
        acc_ref[...] = b_ref[...].astype(jnp.float32) + part

    @pl.when(k > 0)
    def _():
        acc_ref[...] += part

    @pl.when(k == pl.num_programs(2) - 1)
    def _():
        o_ref[...] = jnp.maximum(acc_ref[...], 0.0).astype(o_ref.dtype)


def _pick_tile(dim, pref, align):
    """Largest multiple of `align` <= pref that divides `dim`, else full dim."""
    if dim <= pref or dim % align != 0:
        return dim
    t = (pref // align) * align
    while t >= align and dim % t != 0:
        t -= align
    return t if t >= align else dim


def _vmem_limit_bytes():
    """Generation-aware scoped-VMEM limit (v5e/v6e: 128 MiB, v7x: 64 MiB)."""
    try:
        cap = pltpu.get_tpu_info().vmem_capacity_bytes
    except Exception:
        cap = 64 * 1024 * 1024  # conservative fallback (v7x per-TC VMEM)
    return min(cap * 3 // 4, 100 * 1024 * 1024)


@functools.partial(jax.jit, static_argnames=("tm", "tn", "tk", "out_dtype"))
def hidden_layer_forward(x, weight, bias, *, tm=None, tn=None, tk=None,
                         out_dtype=None):
    """HiddenLayer.forward: relu(x @ weight.T + bias).

    x:      (M, K)
    weight: (N, K)   (PyTorch nn.Linear layout: (out_features, in_features))
    bias:   (N,)
    """
    M, K = x.shape
    N, K2 = weight.shape
    assert K == K2 and bias.shape == (N,)
    out_dtype = jnp.dtype(out_dtype) if out_dtype is not None else x.dtype

    # bf16 operands on the MXU with f32 accumulation: ~3-4x matmul throughput
    # and half the HBM read / double-buffered VMEM footprint of f32.
    x_in = x if x.dtype == jnp.bfloat16 else x.astype(jnp.bfloat16)
    w_in = weight if weight.dtype == jnp.bfloat16 else weight.astype(jnp.bfloat16)
    b2 = bias.astype(jnp.float32).reshape(1, N)

    # Large, lane/MXU-aligned default tiles (256-aligned M/N, K tile >= 256),
    # falling back to the full dimension when it is not tileable.
    tm = tm if tm is not None else _pick_tile(M, 256, 128 if M % 128 == 0 else 8)
    tn = tn if tn is not None else _pick_tile(N, 512, 128)
    tk = tk if tk is not None else _pick_tile(K, 512, 128)
    assert M % tm == 0 and N % tn == 0 and K % tk == 0, (
        "tile sizes must evenly divide (M, N, K); ragged shapes unsupported")
    grid = (M // tm, N // tn, K // tk)

    f32_out = out_dtype == jnp.float32
    kernel = _kernel_f32_out if f32_out else _kernel_acc_out
    scratch = [] if f32_out else [pltpu.VMEM((tm, tn), jnp.float32)]

    return pl.pallas_call(
        kernel,
        out_shape=jax.ShapeDtypeStruct((M, N), out_dtype),
        grid_spec=pltpu.PrefetchScalarGridSpec(
            num_scalar_prefetch=0,
            grid=grid,
            in_specs=[
                pl.BlockSpec((tm, tk), lambda i, j, k: (i, k)),  # x tile
                pl.BlockSpec((tn, tk), lambda i, j, k: (j, k)),  # W tile (N,K layout)
                pl.BlockSpec((1, tn), lambda i, j, k: (0, j)),   # bias slice
            ],
            out_specs=pl.BlockSpec((tm, tn), lambda i, j, k: (i, j)),
            scratch_shapes=scratch,
        ),
        compiler_params=pltpu.CompilerParams(
            dimension_semantics=("parallel", "parallel", "arbitrary"),
            vmem_limit_bytes=_vmem_limit_bytes(),
        ),
    )(x_in, w_in, b2)


if __name__ == "__main__":
    key = jax.random.PRNGKey(0)
    kx, kw, kb = jax.random.split(key, 3)

    # Small shapes consistent with the module, sized so the (1, 2, 2) grid
    # exercises the K-axis accumulator and the parallel N axis.
    batch, input_size, output_size = 128, 256, 256

    # Round inputs through bf16 so the in-kernel bf16 cast is lossless and the
    # f32 reference below is directly comparable.
    x = jax.random.normal(kx, (batch, input_size), jnp.float32)
    x = x.astype(jnp.bfloat16).astype(jnp.float32)
    bound = 1.0 / (input_size ** 0.5)
    weight = jax.random.uniform(
        kw, (output_size, input_size), jnp.float32, -bound, bound
    ).astype(jnp.bfloat16).astype(jnp.float32)
    bias = jax.random.uniform(kb, (output_size,), jnp.float32, -bound, bound)

    ref = jnp.maximum(
        jnp.dot(x, weight.T, precision=lax.Precision.HIGHEST) + bias[None, :],
        0.0,
    )

    # f32-output path (accumulates directly in the resident output tile).
    out = hidden_layer_forward(x, weight, bias, tm=128, tn=128, tk=128)
    out = jax.block_until_ready(out)
    assert out.shape == (batch, output_size)
    assert out.dtype == jnp.float32
    assert bool(jnp.all(out >= 0.0))                 # ReLU invariant
    assert jnp.allclose(out, ref, atol=1e-2, rtol=1e-2)

    # bf16-output path (f32 scratch accumulator, halved activation writeback).
    out_bf16 = hidden_layer_forward(
        x, weight, bias, tm=128, tn=128, tk=128, out_dtype=jnp.bfloat16
    )
    out_bf16 = jax.block_until_ready(out_bf16)
    assert out_bf16.dtype == jnp.bfloat16
    assert jnp.allclose(out_bf16.astype(jnp.float32), ref, atol=5e-2, rtol=5e-2)

    print("KERNEL_OK")
</pallas_src>

<mosaic_0001>
module attributes {stable_mosaic.version = 11 : i64} {
  func.func @_kernel_f32_out(%arg0: i32, %arg1: i32, %arg2: i32, %arg3: memref<128x128xbf16, #tpu.memory_space<vmem>>, %arg4: memref<128x128xbf16, #tpu.memory_space<vmem>>, %arg5: memref<1x128xf32, #tpu.memory_space<vmem>>, %arg6: memref<128x128xf32, #tpu.memory_space<vmem>>) attributes {dimension_semantics = [#tpu.dimension_semantics<parallel>, #tpu.dimension_semantics<parallel>, #tpu.dimension_semantics<arbitrary>], iteration_bounds = array<i64: 1, 2, 2>, scalar_prefetch = 0 : i64, scratch_operands = 0 : i64, tpu.core_type = #tpu.core_type<tc>, window_params = [{transform_indices = @transform_0, window_bounds = array<i64: 128, 128>}, {transform_indices = @transform_1, window_bounds = array<i64: 128, 128>}, {transform_indices = @transform_2, window_bounds = array<i64: 1, 128>}, {transform_indices = @transform_3, window_bounds = array<i64: 128, 128>}]} {
    %c0 = arith.constant 0 : index
    %c0_0 = arith.constant 0 : index
    %0 = vector.load %arg3[%c0, %c0_0] : memref<128x128xbf16, #tpu.memory_space<vmem>>, vector<128x128xbf16>
    %c0_1 = arith.constant 0 : index
    %c0_2 = arith.constant 0 : index
    %1 = vector.load %arg4[%c0_1, %c0_2] : memref<128x128xbf16, #tpu.memory_space<vmem>>, vector<128x128xbf16>
    %cst = arith.constant dense<0.000000e+00> : vector<128x128xf32>
    %2 = tpu.matmul %0, %1, %cst {dimension_numbers = #tpu.dot_dimension_numbers<[1], [1], [0], [0], [0, 0, 1, 0], [], []>} : vector<128x128xbf16>, vector<128x128xbf16>, vector<128x128xf32> -> vector<128x128xf32>
    %c0_i32 = arith.constant 0 : i32
    %3 = arith.cmpi eq, %arg2, %c0_i32 : i32
    %4 = arith.extui %3 : i1 to i32
    %c0_i32_3 = arith.constant 0 : i32
    %5 = arith.cmpi ne, %4, %c0_i32_3 : i32
    scf.if %5 {
      %c0_7 = arith.constant 0 : index
      %c0_8 = arith.constant 0 : index
      %12 = vector.load %arg5[%c0_7, %c0_8] : memref<1x128xf32, #tpu.memory_space<vmem>>, vector<1x128xf32>
      %13 = vector.broadcast %12 : vector<1x128xf32> to vector<128x128xf32>
      %14 = arith.addf %13, %2 : vector<128x128xf32>
      %c0_9 = arith.constant 0 : index
      %c0_10 = arith.constant 0 : index
      %15 = vector.load %arg6[%c0_9, %c0_10] : memref<128x128xf32, #tpu.memory_space<vmem>>, vector<128x128xf32>
      tpu.vector_store %arg6[%c0_9, %c0_10], %14 {strides = array<i32>} : memref<128x128xf32, #tpu.memory_space<vmem>>, vector<128x128xf32>,
    } else {
    }
    %c0_i32_4 = arith.constant 0 : i32
    %6 = arith.cmpi sgt, %arg2, %c0_i32_4 : i32
    %7 = arith.extui %6 : i1 to i32
    %c0_i32_5 = arith.constant 0 : i32
    %8 = arith.cmpi ne, %7, %c0_i32_5 : i32
    scf.if %8 {
      %c0_7 = arith.constant 0 : index
      %c0_8 = arith.constant 0 : index
      %12 = vector.load %arg6[%c0_7, %c0_8] : memref<128x128xf32, #tpu.memory_space<vmem>>, vector<128x128xf32>
      %13 = arith.addf %12, %2 : vector<128x128xf32>
      %c0_9 = arith.constant 0 : index
      %c0_10 = arith.constant 0 : index
      %14 = vector.load %arg6[%c0_9, %c0_10] : memref<128x128xf32, #tpu.memory_space<vmem>>, vector<128x128xf32>
      tpu.vector_store %arg6[%c0_9, %c0_10], %13 {strides = array<i32>} : memref<128x128xf32, #tpu.memory_space<vmem>>, vector<128x128xf32>,
    } else {
    }
    %c1_i32 = arith.constant 1 : i32
    %9 = arith.cmpi eq, %arg2, %c1_i32 : i32
    %10 = arith.extui %9 : i1 to i32
    %c0_i32_6 = arith.constant 0 : i32
    %11 = arith.cmpi ne, %10, %c0_i32_6 : i32
    scf.if %11 {
      %c0_7 = arith.constant 0 : index
      %c0_8 = arith.constant 0 : index
      %12 = vector.load %arg6[%c0_7, %c0_8] : memref<128x128xf32, #tpu.memory_space<vmem>>, vector<128x128xf32>
      %cst_9 = arith.constant 0.000000e+00 : f32
      %13 = vector.broadcast %cst_9 : f32 to vector<128x128xf32>
      %14 = arith.maximumf %12, %13 : vector<128x128xf32>
      %c0_10 = arith.constant 0 : index
      %c0_11 = arith.constant 0 : index
      %15 = vector.load %arg6[%c0_10, %c0_11] : memref<128x128xf32, #tpu.memory_space<vmem>>, vector<128x128xf32>
      tpu.vector_store %arg6[%c0_10, %c0_11], %14 {strides = array<i32>} : memref<128x128xf32, #tpu.memory_space<vmem>>, vector<128x128xf32>,
    } else {
    }
    return
  }
  func.func @transform_0(%arg0: i32, %arg1: i32, %arg2: i32) -> (i32, i32) {
    %c0_i32 = arith.constant 0 : i32
    return %arg0, %arg2 : i32, i32
  }
  func.func @transform_1(%arg0: i32, %arg1: i32, %arg2: i32) -> (i32, i32) {
    %c0_i32 = arith.constant 0 : i32
    return %arg1, %arg2 : i32, i32
  }
  func.func @transform_2(%arg0: i32, %arg1: i32, %arg2: i32) -> (i32, i32) {
    %c0_i32 = arith.constant 0 : i32
    %c0_i32_0 = arith.constant 0 : i32
    return %c0_i32, %arg1 : i32, i32
  }
  func.func @transform_3(%arg0: i32, %arg1: i32, %arg2: i32) -> (i32, i32) {
    %c0_i32 = arith.constant 0 : i32
    return %arg0, %arg1 : i32, i32
  }
}

</mosaic_0001>

<bundles_post_ra>
// kernel: hidden_layer_forward.1
= control target key start
LH: loop header
LB: loop body
LE: loop exit
PB: predicated region body
PF: predicated region fallthrough
CT: control target
= control target key end

     0   :  { %s1721_s0 = inlined_call_operand.vmem [shape: bf16[128,256], index: 0, kind: input, shape index: {}]   ;;  %s1722_s1 = inlined_call_operand.vmem [shape: bf16[256,256], index: 1, kind: input, shape index: {}]   ;;  %s1723_s2 = inlined_call_operand.vmem [shape: f32[1,256], index: 2, kind: input, shape index: {}]   ;;  %s1724_s3 = inlined_call_operand.hbm [shape: f32[128,256], index: 3, kind: output, shape index: {}]  }
   0x1   :  { %1727 = sst [smem:[#allocation9_spill]] %s1721_s0 }
   0x2   :  { %8 = vsyncpa [#allocation5], 0 }
   0x3   :  { %10 = vsyncpa [#allocation5 + $0x1], 0  ;;  %s1320_s12 = smov 0   ;;  %s1322_s13 = smov 0  }
   0x4   :  { %s1324_s14 = smov 0   ;;  %s1326_s15 = smov 0  }
   0x5   :  { %s1328_s16 = smov 0   ;;  %s1330_s17 = smov 0  }
   0x6   :  { %s1332_s18 = smov 0   ;;  %s1334_s19 = smov 0  }
   0x7   :  { %s1336_s20 = smov 0   ;;  %s1338_s21 = smov 0  }
   0x8   :  { %s1340_s22 = smov 0   ;;  %s1342_s23 = smov 0  }
   0x9 LB: > { %s943_s24 = sadd.s32 4294967295, %s1294_s23   ;;  %s944_s25 = sadd.s32 4294967294, %s1294_s23   ;;  %s1294_s23 = sphi %s1342_s23, %s16_s23   ;;  %s1290_s22 = sphi %s1340_s22, %s1747_s22   ;;  %s1286_s21 = sphi %s1338_s21, %s1746_s21   ;;  %s1282_s20 = sphi %s1336_s20, %s1745_s20   ;;  %s1278_s19 = sphi %s1334_s19, %s1744_s19   ;;  %s1274_s18 = sphi %s1332_s18, %s1743_s18   ;;  %s1270_s17 = sphi %s1330_s17, %s1742_s17   ;;  %s1266_s16 = sphi %s1328_s16, %s1741_s16   ;;  %s1262_s15 = sphi %s1326_s15, %s1740_s15   ;;  %s1258_s14 = sphi %s1324_s14, %s1739_s14   ;;  %s1254_s13 = sphi %s1322_s13, %s1738_s13   ;;  %s1250_s12 = sphi %s1320_s12, %s1737_s12  }
   0xa   : > { %s28_s26 = sadd.s32 1, %s1286_s21  ;;  %s31_s27 = sadd.s32 1, %s1290_s22 }
   0xb   : > { %p29_p0 = scmp.ge.s32.totalorder %s28_s26, 2  ;;  %s44_s28 = sadd.s32 1, %s1274_s18 }
   0xc   : > { %p51_p1 = scmp.ne.s32.totalorder %s1274_s18, %s1270_s17  ;;  %p52_p2 = scmp.eq.s32.totalorder %s1294_s23, 0 }
   0xd   : > { %s1749_s26 = smov (%p29_p0, %s28_s26), 0  ;;  %s1751_s27 = smov (!%p29_p0, %s31_s27), %s1290_s22 }
   0xe   : > { %1728 = sst [smem:[#allocation7_spill]] %s1749_s26  ;;  %s40_s29 = ssub.s32 %s1286_s21, %s1749_s26 }
   0xf   : > { %p1393_p3 = por %p52_p2, %p51_p1  ;;  %p33_p4 = scmp.ge.s32.totalorder %s1751_s27, 2 }
  0x10   : > { %p42_p5 = scmp.eq.s32.totalorder %s40_s29, 0  ;;  %s72_s4 = sadd.s32 1, %s1266_s16 }
  0x11   : > { %p79_p6 = scmp.ne.s32.totalorder %s1266_s16, %s1262_s15  ;;  %s1753_s27 = smov (%p33_p4, %s1751_s27), 0 }
  0x12   : > { %1730 = sst [smem:[#allocation8_spill]] %s1753_s27  ;;  %s67_s6 = ssub.s32 %s1290_s22, %s1753_s27 }
  0x13   : > { %s1403_s5 = scalar_select %p42_p5, %s1274_s18, %s44_s28  }
  0x14   : > { %p1407_p7 = por %p79_p6, %p52_p2  ;;  %s69_s8 = sor.u32 %s67_s6, %s40_s29 }
  0x15   : > { %p124_p8 = scmp.eq.s32.totalorder %s67_s6, 0  ;;  %p70_p9 = scmp.eq.s32.totalorder %s69_s8, 0 }
  0x16   : > { %s126_s9 = sadd.s32 1, %s1258_s14  ;;  %p136_p10 = scmp.ne.s32.totalorder %s1258_s14, %s1254_s13 }
  0x17   : > { %s1413_s10 = scalar_select %p124_p8, %s1258_s14, %s126_s9  }
  0x18   : > { %s1416_s11 = scalar_select %p70_p9, %s1266_s16, %s72_s4  }
  0x19   : > { %p137_p11 = scmp.eq.s32.totalorder %s943_s24, 3  ;;  %p142_p12 = scmp.ne.s32.totalorder %s1254_s13, %s1250_s12 }
  0x1a   : > { %p143_p13 = scmp.eq.s32.totalorder %s944_s25, 3  ;;  %p946_p2 = scmp.ge.s32.totalorder %s1294_s23, 4 }
  0x1b   : > { %p1422_p0 = por %p137_p11, %p136_p10 }
  0x1c   : > { %p1426_p1 = por %p143_p13, %p142_p12  ;;  %159 = sbr.rel (%p946_p2) target bundleno = 71 (0x47), region = 16 }
  0x23   : > { %162 = sbr.rel (!%p1393_p3) target bundleno = 55 (0x37), region = 20  ;;  %s164_s29 = sand.u32 (%p1393_p3), 1, %s1274_s18  }
  0x24   : > { %s948_s24 = sshll.u32 (%p1393_p3), %s1286_s21, 2  ;;  %s947_s4 = sshll.u32 (%p1393_p3), %s164_s29, 6 }
  0x25   : > { %s1734_s0 = sld [smem:[#allocation9_spill]] (%p1393_p3)  ;;  %s166_s30 = scalar_lea.vmem (%p1393_p3), [#allocation2], %s947_s4 }
  0x2b   : > { %s1438_s8 = scalar_lea.vmem %s1734_s0, %s948_s24 }
  0x2c   : > { %v187_v0 = vld [vmem:[%s1438_s8] sm:$0xf]  ;;  %v189_v1 = vld [vmem:[%s1438_s8 + $0x8] sm:$0xf]  ;;  %v191_v2 = vld [vmem:[%s1438_s8 + $0x10] sm:$0xf] }
  0x2d   : > { %188 = vst [vmem:[%s166_s30] sm:$0xf] %v187_v0  ;;  %190 = vst [vmem:[%s166_s30 + $0x4] sm:$0xf] %v189_v1  ;;  %v193_v3 = vld [vmem:[%s1438_s8 + $0x18] sm:$0xf] }
  0x2e   : > { %v195_v4 = vld [vmem:[%s1438_s8 + $0x20] sm:$0xf]  ;;  %192 = vst [vmem:[%s166_s30 + $0x8] sm:$0xf] %v191_v2  ;;  %194 = vst [vmem:[%s166_s30 + $0xc] sm:$0xf] %v193_v3 }
  0x2f   : > { %196 = vst [vmem:[%s166_s30 + $0x10] sm:$0xf] %v195_v4  ;;  %v197_v5 = vld [vmem:[%s1438_s8 + $0x28] sm:$0xf]  ;;  %v199_v6 = vld [vmem:[%s1438_s8 + $0x30] sm:$0xf] }
  0x30   : > { %v201_v7 = vld [vmem:[%s1438_s8 + $0x38] sm:$0xf]  ;;  %198 = vst [vmem:[%s166_s30 + $0x14] sm:$0xf] %v197_v5  ;;  %200 = vst [vmem:[%s166_s30 + $0x18] sm:$0xf] %v199_v6 }
  0x31   : > { %202 = vst [vmem:[%s166_s30 + $0x1c] sm:$0xf] %v201_v7  ;;  %v203_v8 = vld [vmem:[%s1438_s8 + $0x40] sm:$0xf]  ;;  %v205_v9 = vld [vmem:[%s1438_s8 + $0x48] sm:$0xf] }
  0x32   : > { %v207_v10 = vld [vmem:[%s1438_s8 + $0x50] sm:$0xf]  ;;  %204 = vst [vmem:[%s166_s30 + $0x20] sm:$0xf] %v203_v8  ;;  %206 = vst [vmem:[%s166_s30 + $0x24] sm:$0xf] %v205_v9 }
  0x33   : > { %208 = vst [vmem:[%s166_s30 + $0x28] sm:$0xf] %v207_v10  ;;  %v209_v11 = vld [vmem:[%s1438_s8 + $0x58] sm:$0xf]  ;;  %v211_v12 = vld [vmem:[%s1438_s8 + $0x60] sm:$0xf] }
  0x34   : > { %v213_v13 = vld [vmem:[%s1438_s8 + $0x68] sm:$0xf]  ;;  %210 = vst [vmem:[%s166_s30 + $0x2c] sm:$0xf] %v209_v11  ;;  %212 = vst [vmem:[%s166_s30 + $0x30] sm:$0xf] %v211_v12 }
  0x35   : > { %214 = vst [vmem:[%s166_s30 + $0x34] sm:$0xf] %v213_v13  ;;  %v215_v14 = vld [vmem:[%s1438_s8 + $0x70] sm:$0xf]  ;;  %v217_v15 = vld [vmem:[%s1438_s8 + $0x78] sm:$0xf] }
  0x36   : > { %216 = vst [vmem:[%s166_s30 + $0x38] sm:$0xf] %v215_v14  ;;  %218 = vst [vmem:[%s166_s30 + $0x3c] sm:$0xf] %v217_v15 }
  0x37 PF: > { %273 = sbr.rel (!%p1407_p7) target bundleno = 71 (0x47), region = 61  ;;  %s275_s9 = sand.u32 (%p1407_p7), 1, %s1266_s16  }
  0x38   : > { %s981_s29 = sshll.u32 (%p1407_p7), %s1290_s22, 5  ;;  %s949_s24 = sshll.u32 (%p1407_p7), %s275_s9, 6 }
  0x39   : > { %s280_s4 = sadd.s32 (%p1407_p7), %s1286_s21, %s981_s29  ;;  %s277_s7 = scalar_lea.vmem (%p1407_p7), [#allocation3], %s949_s24 }
  0x3a   : > { %s952_s25 = sshll.u32 (%p1407_p7), %s280_s4, 2 }
  0x3b   : > { %s1464_s26 = scalar_lea.vmem (%p1407_p7), %s1722_s1, %s952_s25 }
  0x3c   : > { %v298_v16 = vld [vmem:[%s1464_s26] sm:$0xf] (%p1407_p7)  ;;  %v300_v17 = vld [vmem:[%s1464_s26 + $0x8] sm:$0xf] (%p1407_p7)  ;;  %v302_v18 = vld [vmem:[%s1464_s26 + $0x10] sm:$0xf] (%p1407_p7) }
  0x3d   : > { %299 = vst [vmem:[%s277_s7] sm:$0xf] (%p1407_p7), %v298_v16  ;;  %301 = vst [vmem:[%s277_s7 + $0x4] sm:$0xf] (%p1407_p7), %v300_v17  ;;  %v304_v19 = vld [vmem:[%s1464_s26 + $0x18] sm:$0xf] (%p1407_p7) }
  0x3e   : > { %303 = vst [vmem:[%s277_s7 + $0x8] sm:$0xf] %v302_v18  ;;  %v306_v20 = vld [vmem:[%s1464_s26 + $0x20] sm:$0xf]  ;;  %v308_v21 = vld [vmem:[%s1464_s26 + $0x28] sm:$0xf] }
  0x3f   : > { %305 = vst [vmem:[%s277_s7 + $0xc] sm:$0xf] %v304_v19  ;;  %307 = vst [vmem:[%s277_s7 + $0x10] sm:$0xf] %v306_v20  ;;  %v310_v22 = vld [vmem:[%s1464_s26 + $0x30] sm:$0xf] }
  0x40   : > { %309 = vst [vmem:[%s277_s7 + $0x14] sm:$0xf] %v308_v21  ;;  %v312_v23 = vld [vmem:[%s1464_s26 + $0x38] sm:$0xf]  ;;  %v314_v24 = vld [vmem:[%s1464_s26 + $0x40] sm:$0xf] }
  0x41   : > { %311 = vst [vmem:[%s277_s7 + $0x18] sm:$0xf] %v310_v22  ;;  %313 = vst [vmem:[%s277_s7 + $0x1c] sm:$0xf] %v312_v23  ;;  %v316_v25 = vld [vmem:[%s1464_s26 + $0x48] sm:$0xf] }
  0x42   : > { %315 = vst [vmem:[%s277_s7 + $0x20] sm:$0xf] %v314_v24  ;;  %v318_v26 = vld [vmem:[%s1464_s26 + $0x50] sm:$0xf]  ;;  %v320_v27 = vld [vmem:[%s1464_s26 + $0x58] sm:$0xf] }
  0x43   : > { %317 = vst [vmem:[%s277_s7 + $0x24] sm:$0xf] %v316_v25  ;;  %319 = vst [vmem:[%s277_s7 + $0x28] sm:$0xf] %v318_v26  ;;  %v322_v28 = vld [vmem:[%s1464_s26 + $0x60] sm:$0xf] }
  0x44   : > { %321 = vst [vmem:[%s277_s7 + $0x2c] sm:$0xf] %v320_v27  ;;  %v324_v29 = vld [vmem:[%s1464_s26 + $0x68] sm:$0xf]  ;;  %v326_v30 = vld [vmem:[%s1464_s26 + $0x70] sm:$0xf] }
  0x45   : > { %323 = vst [vmem:[%s277_s7 + $0x30] sm:$0xf] %v322_v28  ;;  %325 = vst [vmem:[%s277_s7 + $0x34] sm:$0xf] %v324_v29  ;;  %v328_v31 = vld [vmem:[%s1464_s26 + $0x78] sm:$0xf] }
  0x46   : > { %327 = vst [vmem:[%s277_s7 + $0x38] sm:$0xf] %v326_v30  ;;  %329 = vst [vmem:[%s277_s7 + $0x3c] sm:$0xf] %v328_v31 }
  0x47 PF: > { %p953_p3 = scmp.ge.s32.totalorder %s1294_s23, 1  ;;  %p389_p4 = scmp.lt.s32.totalorder %s1294_s23, 5 }
  0x49   : > { %p390_p5 = pnand %p953_p3, %p389_p4 }
  0x4a   : > { %s403_s0 = sand.u32 (!%p390_p5), 1, %s1262_s15   ;;  %s430_s8 = sand.u32 (!%p390_p5), 1, %s1254_s13  }
  0x4b   : > { %393 = sbr.rel (%p390_p5) target bundleno = 422 (0x1a6), region = 106  ;;  %s955_s30 = sshll.u32 (!%p390_p5), %s403_s0, 6 }
  0x4c   : > { %s1488_s26 = sshll.u32 (!%p390_p5), %s430_s8, 7  ;;  %p435_p6 = scmp.lt.s32.totalorder (!%p390_p5), %s1282_s20, 1 }
  0x4d   : > { %s1491_s9 = scalar_lea.vmem (!%p390_p5), [#allocation3], %s955_s30  ;;  %s396_s29 = sand.u32 (!%p390_p5), 1, %s1270_s17  }
  0x4e   : > { %v1152_v32 = vld [vmem:[%s1491_s9] sm:$0xff] (!%p390_p5)   ;;  %v1153_v33 = vld [vmem:[%s1491_s9 + $0x8] sm:$0xff] (!%p390_p5)   ;;  %s954_s15 = sshll.u32 (!%p390_p5), %s396_s29, 6  ;;  %v1154_v34 = vld [vmem:[%s1491_s9 + $0x10] sm:$0xff] (!%p390_p5)   ;;  %s1538_s17 = scalar_lea.vmem (!%p390_p5), [#allocation4], %s1488_s26 }
  0x4f   : > { %998 = vmatprep.subr.bf16.mxu0 (!%p390_p5), %v1152_v32  ;;  %1030 = vmatprep.subr.bf16.mxu1 (!%p390_p5), %v1152_v32  ;;  %s1504_s7 = scalar_lea.vmem (!%p390_p5), [#allocation2], %s954_s15  ;;  %v1155_v37 = vld [vmem:[%s1491_s9 + $0x18] sm:$0xff] (!%p390_p5)   ;;  %v1156_v38 = vld [vmem:[%s1491_s9 + $0x20] sm:$0xff] (!%p390_p5)   ;;  %v1157_v39 = vld [vmem:[%s1491_s9 + $0x28] sm:$0xff] (!%p390_p5)   ;;  %p973_p7 = scmp.ne.s32.totalorder (!%p390_p5), %s1278_s19, 0 }
  0x50   : > { %999 = vmatpush3.bf16.xpose.msra.mxu0 (!%p390_p5), %v1152_v32  ;;  %1038 = vmatpush3.bf16.xpose.msra.mxu1 (!%p390_p5), %v1152_v32  ;;  %v1160_v35 = vld [vmem:[%s1504_s7] sm:$0xff] (!%p390_p5)   ;;  %v1158_v40 = vld [vmem:[%s1491_s9 + $0x30] sm:$0xff] (!%p390_p5)   ;;  %v1159_v41 = vld [vmem:[%s1491_s9 + $0x38] sm:$0xff] (!%p390_p5)  }
  0x51   : > { %1000 = vmatprep.subr.bf16.mxu0 (!%p390_p5), %v1153_v33  ;;  %1031 = vmatprep.subr.bf16.mxu1 (!%p390_p5), %v1153_v33  ;;  %v1161_v36 = vld [vmem:[%s1504_s7 + $0x20] sm:$0xff] (!%p390_p5)   ;;  %v1162_v42 = vld [vmem:[%s1504_s7 + $0x8] sm:$0xff] (!%p390_p5)   ;;  %v1164_v44 = vld [vmem:[%s1504_s7 + $0x10] sm:$0xff] (!%p390_p5)  }
  0x52   : > { %s1497_s24 = scalar_select %p435_p6, %s1282_s20, 1  ;;  %1014 = vmatprep.mubr.bf16.mxu0 %v1160_v35  ;;  %1022 = vmatprep.mubr.bf16.mxu1 %v1161_v36  ;;  %v1163_v43 = vld [vmem:[%s1504_s7 + $0x28] sm:$0xff]   ;;  %v1165_v45 = vld [vmem:[%s1504_s7 + $0x30] sm:$0xff]   ;;  %v1166_v46 = vld [vmem:[%s1504_s7 + $0x18] sm:$0xff]  }
  0x53   : > { %v1167_v47 = vld [vmem:[%s1504_s7 + $0x38] sm:$0xff]  }
  0x54   : > { %s437_s6 = scalar_lea.vmem %s1723_s2, %s1497_s24 }
  0x55   : > { %v974_v0 = vld [vmem:[%s437_s6] ss:$0 sm:$0xff] (!%p973_p7) }
  0x58   : > { %1001 = vmatpush3.bf16.xpose.msra.mxu0 %v1153_v33  ;;  %1039 = vmatpush3.bf16.xpose.msra.mxu1 %v1153_v33 }
  0x59   : > { %1002 = vmatprep.subr.bf16.mxu0 %v1154_v34  ;;  %1032 = vmatprep.subr.bf16.mxu1 %v1154_v34 }
  0x60   : > { %1003 = vmatpush3.bf16.xpose.msra.mxu0 %v1154_v34  ;;  %1040 = vmatpush3.bf16.xpose.msra.mxu1 %v1154_v34 }
  0x61   : > { %1004 = vmatprep.subr.bf16.mxu0 %v1155_v37  ;;  %1033 = vmatprep.subr.bf16.mxu1 %v1155_v37 }
  0x68   : > { %1005 = vmatpush3.bf16.xpose.msra.mxu0 %v1155_v37  ;;  %1041 = vmatpush3.bf16.xpose.msra.mxu1 %v1155_v37 }
  0x69   : > { %1006 = vmatprep.subr.bf16.mxu0 %v1156_v38  ;;  %1034 = vmatprep.subr.bf16.mxu1 %v1156_v38 }
  0x70   : > { %1007 = vmatpush3.bf16.xpose.msra.mxu0 %v1156_v38  ;;  %1042 = vmatpush3.bf16.xpose.msra.mxu1 %v1156_v38 }
  0x71   : > { %1008 = vmatprep.subr.bf16.mxu0 %v1157_v39  ;;  %1035 = vmatprep.subr.bf16.mxu1 %v1157_v39 }
  0x78   : > { %1009 = vmatpush3.bf16.xpose.msra.mxu0 %v1157_v39  ;;  %1043 = vmatpush3.bf16.xpose.msra.mxu1 %v1157_v39 }
  0x79   : > { %1010 = vmatprep.subr.bf16.mxu0 %v1158_v40  ;;  %1036 = vmatprep.subr.bf16.mxu1 %v1158_v40 }
  0x80   : > { %1011 = vmatpush3.bf16.xpose.msra.mxu0 %v1158_v40  ;;  %1044 = vmatpush3.bf16.xpose.msra.mxu1 %v1158_v40 }
  0x81   : > { %1012 = vmatprep.subr.bf16.mxu0 %v1159_v41  ;;  %1037 = vmatprep.subr.bf16.mxu1 %v1159_v41 }
  0x88   : > { %1013 = vmatpush3.bf16.xpose.msra.mxu0 %v1159_v41  ;;  %1045 = vmatpush3.bf16.xpose.msra.mxu1 %v1159_v41 }
  0x8f   : > { %1015 = vmatmul.mubr.bf16.vlgmr.msra.gmra.mrb[0].mxu0 %v1162_v42  ;;  %1023 = vmatmul.mubr.bf16.vlgmr.msra.gmra.mrb[0].mxu1 %v1163_v43 }
  0x90   : > { %1018 = vmatprep.mubr.bf16.mxu0 %v1164_v44  ;;  %1026 = vmatprep.mubr.bf16.mxu1 %v1165_v45 }
  0x97   : > { %1019 = vmatmul.mubr.bf16.gmra.mrb[4].mxu0 %v1166_v46  ;;  %1027 = vmatmul.mubr.bf16.gmra.mrb[4].mxu1 %v1167_v47 }
 0x162   : > { %v1016_v48 = vpop.f32.mrb[0].mxu0  ;;  %v1519_v49 = vpop.f32.mrb[0].mxu1 }
 0x163   : > { %v602_v50 = vpop.f32.mrb[1].mxu0  ;;  %v1521_v51 = vpop.f32.mrb[1].mxu1  ;;  %v678_v3 = vadd.f32 (!%p973_p7), %v1016_v48, %v974_v0  ;;  %v686_v11 = vadd.f32 (!%p973_p7), %v1519_v49, %v974_v0 }
 0x164   : > { %v1017_v52 = vpop.f32.mrb[2].mxu0  ;;  %v1523_v53 = vpop.f32.mrb[2].mxu1  ;;  %v676_v1 = vadd.f32 (!%p973_p7), %v974_v0, %v602_v50  ;;  %v684_v9 = vadd.f32 (!%p973_p7), %v974_v0, %v1521_v51 }
 0x165   : > { %v605_v54 = vpop.f32.mrb[3].mxu0  ;;  %v1525_v55 = vpop.f32.mrb[3].mxu1  ;;  %v679_v4 = vadd.f32 (!%p973_p7), %v1017_v52, %v974_v0  ;;  %694 = vst [vmem:[%s1538_s17 + $0x10] sm:$0xff] (!%p973_p7), %v678_v3  ;;  %v687_v12 = vadd.f32 (!%p973_p7), %v1523_v53, %v974_v0  ;;  %702 = vst [vmem:[%s1538_s17 + $0x50] sm:$0xff] (!%p973_p7), %v686_v11 }
 0x166   : > { %v677_v2 = vadd.f32 (!%p973_p7), %v974_v0, %v605_v54  ;;  %692 = vst [vmem:[%s1538_s17] sm:$0xff] (!%p973_p7), %v676_v1  ;;  %v685_v10 = vadd.f32 (!%p973_p7), %v974_v0, %v1525_v55  ;;  %700 = vst [vmem:[%s1538_s17 + $0x40] sm:$0xff] (!%p973_p7), %v684_v9 }
 0x167   : > { %668 = sbr.rel (%p973_p7) target bundleno = 369 (0x171), region = 118  ;;  %695 = vst [vmem:[%s1538_s17 + $0x18] sm:$0xff] (!%p973_p7), %v679_v4  ;;  %703 = vst [vmem:[%s1538_s17 + $0x58] sm:$0xff] (!%p973_p7), %v687_v12 }
 0x168   : > { %693 = vst [vmem:[%s1538_s17 + $0x8] sm:$0xff] (!%p973_p7), %v677_v2  ;;  %701 = vst [vmem:[%s1538_s17 + $0x48] sm:$0xff] (!%p973_p7), %v685_v10 }
 0x16a   : > { %v1527_v56 = vpop.f32.mrb[4].mxu0  ;;  %v1529_v57 = vpop.f32.mrb[4].mxu1 }
 0x16b   : > { %v618_v58 = vpop.f32.mrb[5].mxu0  ;;  %v1531_v59 = vpop.f32.mrb[5].mxu1  ;;  %v682_v7 = vadd.f32 (!%p973_p7), %v1527_v56, %v974_v0  ;;  %v690_v15 = vadd.f32 (!%p973_p7), %v1529_v57, %v974_v0 }
 0x16c   : > { %v1021_v60 = vpop.f32.mrb[6].mxu0  ;;  %v1533_v61 = vpop.f32.mrb[6].mxu1  ;;  %v680_v5 = vadd.f32 (!%p973_p7), %v974_v0, %v618_v58  ;;  %v688_v13 = vadd.f32 (!%p973_p7), %v974_v0, %v1531_v59 }
 0x16d   : > { %v621_v62 = vpop.f32.mrb[7].mxu0  ;;  %v1535_v63 = vpop.f32.mrb[7].mxu1  ;;  %v683_v8 = vadd.f32 (!%p973_p7), %v1021_v60, %v974_v0  ;;  %698 = vst [vmem:[%s1538_s17 + $0x30] sm:$0xff] (!%p973_p7), %v682_v7  ;;  %v691_v16 = vadd.f32 (!%p973_p7), %v1533_v61, %v974_v0  ;;  %706 = vst [vmem:[%s1538_s17 + $0x70] sm:$0xff] (!%p973_p7), %v690_v15 }
 0x16e   : > { %v681_v6 = vadd.f32 %v974_v0, %v621_v62  ;;  %696 = vst [vmem:[%s1538_s17 + $0x20] sm:$0xff] %v680_v5  ;;  %v689_v14 = vadd.f32 %v974_v0, %v1535_v63  ;;  %704 = vst [vmem:[%s1538_s17 + $0x60] sm:$0xff] %v688_v13 }
 0x16f   : > { %699 = vst [vmem:[%s1538_s17 + $0x38] sm:$0xff] %v683_v8  ;;  %707 = vst [vmem:[%s1538_s17 + $0x78] sm:$0xff] %v691_v16 }
 0x170   : > { %697 = vst [vmem:[%s1538_s17 + $0x28] sm:$0xff] %v681_v6  ;;  %705 = vst [vmem:[%s1538_s17 + $0x68] sm:$0xff] %v689_v14 }
 0x171 PF: > { %p975_p8 = scmp.le.s32.totalorder %s1278_s19, 0 }
 0x172   : > { %v712_v17 = vld [vmem:[%s1538_s17] sm:$0xff] (!%p975_p8)  ;;  %v713_v18 = vld [vmem:[%s1538_s17 + $0x8] sm:$0xff] (!%p975_p8)  ;;  %v714_v19 = vld [vmem:[%s1538_s17 + $0x10] sm:$0xff] (!%p975_p8) }
 0x173   : > { %711 = sbr.rel (%p975_p8) target bundleno = 382 (0x17e), region = 122  ;;  %v728_v20 = vadd.f32 (!%p975_p8), %v712_v17, %v602_v50  ;;  %v729_v21 = vadd.f32 (!%p975_p8), %v713_v18, %v605_v54  ;;  %v730_v22 = vadd.f32 (!%p975_p8), %v1016_v48, %v714_v19  ;;  %v715_v23 = vld [vmem:[%s1538_s17 + $0x18] sm:$0xff] (!%p975_p8)  ;;  %v720_v31 = vld [vmem:[%s1538_s17 + $0x40] sm:$0xff] (!%p975_p8)  ;;  %v721_v35 = vld [vmem:[%s1538_s17 + $0x48] sm:$0xff] (!%p975_p8) }
 0x174   : > { %v731_v26 = vadd.f32 (!%p975_p8), %v1017_v52, %v715_v23  ;;  %v736_v34 = vadd.f32 (!%p975_p8), %v720_v31, %v1521_v51  ;;  %v722_v36 = vld [vmem:[%s1538_s17 + $0x50] sm:$0xff] (!%p975_p8)  ;;  %v723_v37 = vld [vmem:[%s1538_s17 + $0x58] sm:$0xff] (!%p975_p8)  ;;  %v737_v38 = vadd.f32 (!%p975_p8), %v721_v35, %v1525_v55 }
 0x175   : > { %744 = vst [vmem:[%s1538_s17] sm:$0xff] (!%p975_p8), %v728_v20  ;;  %745 = vst [vmem:[%s1538_s17 + $0x8] sm:$0xff] (!%p975_p8), %v729_v21  ;;  %v738_v39 = vadd.f32 (!%p975_p8), %v1519_v49, %v722_v36  ;;  %v739_v40 = vadd.f32 (!%p975_p8), %v1523_v53, %v723_v37 }
 0x176   : > { %v719_v30 = vld [vmem:[%s1538_s17 + $0x38] sm:$0xff] (!%p975_p8)  ;;  %746 = vst [vmem:[%s1538_s17 + $0x10] sm:$0xff] (!%p975_p8), %v730_v22  ;;  %747 = vst [vmem:[%s1538_s17 + $0x18] sm:$0xff] (!%p975_p8), %v731_v26 }
 0x177   : > { %v717_v25 = vld [vmem:[%s1538_s17 + $0x28] sm:$0xff] (!%p975_p8)  ;;  %v718_v29 = vld [vmem:[%s1538_s17 + $0x30] sm:$0xff] (!%p975_p8)  ;;  %v735_v33 = vadd.f32 (!%p975_p8), %v1021_v60, %v719_v30  ;;  %752 = vst [vmem:[%s1538_s17 + $0x40] sm:$0xff] (!%p975_p8), %v736_v34  ;;  %v727_v47 = vld [vmem:[%s1538_s17 + $0x78] sm:$0xff] (!%p975_p8) }
 0x178   : > { %v716_v24 = vld [vmem:[%s1538_s17 + $0x20] sm:$0xff] (!%p975_p8)  ;;  %v733_v28 = vadd.f32 (!%p975_p8), %v717_v25, %v621_v62  ;;  %v734_v32 = vadd.f32 (!%p975_p8), %v1527_v56, %v718_v29  ;;  %v725_v42 = vld [vmem:[%s1538_s17 + $0x68] sm:$0xff] (!%p975_p8)  ;;  %v726_v43 = vld [vmem:[%s1538_s17 + $0x70] sm:$0xff] (!%p975_p8)  ;;  %753 = vst [vmem:[%s1538_s17 + $0x48] sm:$0xff] (!%p975_p8), %v737_v38  ;;  %v743_v48 = vadd.f32 (!%p975_p8), %v1533_v61, %v727_v47 }
 0x179   : > { %v732_v27 = vadd.f32 (!%p975_p8), %v716_v24, %v618_v58  ;;  %v724_v41 = vld [vmem:[%s1538_s17 + $0x60] sm:$0xff] (!%p975_p8)  ;;  %751 = vst [vmem:[%s1538_s17 + $0x38] sm:$0xff] (!%p975_p8), %v735_v33  ;;  %v741_v45 = vadd.f32 (!%p975_p8), %v725_v42, %v1535_v63  ;;  %v742_v46 = vadd.f32 (!%p975_p8), %v1529_v57, %v726_v43  ;;  %754 = vst [vmem:[%s1538_s17 + $0x50] sm:$0xff] (!%p975_p8), %v738_v39 }
 0x17a   : > { %749 = vst [vmem:[%s1538_s17 + $0x28] sm:$0xff] %v733_v28  ;;  %750 = vst [vmem:[%s1538_s17 + $0x30] sm:$0xff] %v734_v32  ;;  %v740_v44 = vadd.f32 %v724_v41, %v1531_v59 }
 0x17b   : > { %748 = vst [vmem:[%s1538_s17 + $0x20] sm:$0xff] %v732_v27  ;;  %755 = vst [vmem:[%s1538_s17 + $0x58] sm:$0xff] %v739_v40 }
 0x17c   : > { %756 = vst [vmem:[%s1538_s17 + $0x60] sm:$0xff] %v740_v44  ;;  %757 = vst [vmem:[%s1538_s17 + $0x68] sm:$0xff] %v741_v45 }
 0x17d   : > { %758 = vst [vmem:[%s1538_s17 + $0x70] sm:$0xff] %v742_v46  ;;  %759 = vst [vmem:[%s1538_s17 + $0x78] sm:$0xff] %v743_v48 }
 0x17e PF: > { %p976_p9 = scmp.ne.s32.totalorder %s1278_s19, 1 }
 0x180   : > { %763 = sbr.rel (%p976_p9) target bundleno = 396 (0x18c), region = 126  ;;  %v764_v49 = vld [vmem:[%s1538_s17] sm:$0xff] (!%p976_p9)  ;;  %v765_v50 = vld [vmem:[%s1538_s17 + $0x8] sm:$0xff] (!%p976_p9) }
 0x181   : > { %v766_v51 = vld [vmem:[%s1538_s17 + $0x10] sm:$0xff] (!%p976_p9)  ;;  %v780_v52 = vmax.f32 (!%p976_p9), %v764_v49, 0.0  ;;  %v781_v53 = vmax.f32 (!%p976_p9), %v765_v50, 0.0  ;;  %v767_v55 = vld [vmem:[%s1538_s17 + $0x18] sm:$0xff] (!%p976_p9) }
 0x182   : > { %v782_v54 = vmax.f32 (!%p976_p9), %v766_v51, 0.0  ;;  %v768_v56 = vld [vmem:[%s1538_s17 + $0x20] sm:$0xff] (!%p976_p9)  ;;  %v783_v58 = vmax.f32 (!%p976_p9), %v767_v55, 0.0  ;;  %v775_v5 = vld [vmem:[%s1538_s17 + $0x58] sm:$0xff] (!%p976_p9) }
 0x183   : > { %v784_v59 = vmax.f32 (!%p976_p9), %v768_v56, 0.0  ;;  %v772_v63 = vld [vmem:[%s1538_s17 + $0x40] sm:$0xff] (!%p976_p9)  ;;  %796 = vst [vmem:[%s1538_s17] sm:$0xff] (!%p976_p9), %v780_v52  ;;  %797 = vst [vmem:[%s1538_s17 + $0x8] sm:$0xff] (!%p976_p9), %v781_v53  ;;  %v773_v3 = vld [vmem:[%s1538_s17 + $0x48] sm:$0xff] (!%p976_p9)  ;;  %v791_v8 = vmax.f32 (!%p976_p9), %v775_v5, 0.0 }
 0x184   : > { %v771_v62 = vld [vmem:[%s1538_s17 + $0x38] sm:$0xff] (!%p976_p9)  ;;  %798 = vst [vmem:[%s1538_s17 + $0x10] sm:$0xff] (!%p976_p9), %v782_v54  ;;  %v788_v2 = vmax.f32 (!%p976_p9), %v772_v63, 0.0  ;;  %v774_v4 = vld [vmem:[%s1538_s17 + $0x50] sm:$0xff] (!%p976_p9)  ;;  %799 = vst [vmem:[%s1538_s17 + $0x18] sm:$0xff] (!%p976_p9), %v783_v58  ;;  %v789_v6 = vmax.f32 (!%p976_p9), %v773_v3, 0.0 }
 0x185   : > { %v769_v57 = vld [vmem:[%s1538_s17 + $0x28] sm:$0xff] (!%p976_p9)  ;;  %v770_v61 = vld [vmem:[%s1538_s17 + $0x30] sm:$0xff] (!%p976_p9)  ;;  %v787_v1 = vmax.f32 (!%p976_p9), %v771_v62, 0.0  ;;  %800 = vst [vmem:[%s1538_s17 + $0x20] sm:$0xff] (!%p976_p9), %v784_v59  ;;  %v790_v7 = vmax.f32 (!%p976_p9), %v774_v4, 0.0  ;;  %v776_v9 = vld [vmem:[%s1538_s17 + $0x60] sm:$0xff] (!%p976_p9) }
 0x186   : > { %v785_v60 = vmax.f32 (!%p976_p9), %v769_v57, 0.0  ;;  %v786_v0 = vmax.f32 (!%p976_p9), %v770_v61, 0.0  ;;  %v777_v10 = vld [vmem:[%s1538_s17 + $0x68] sm:$0xff] (!%p976_p9)  ;;  %v778_v11 = vld [vmem:[%s1538_s17 + $0x70] sm:$0xff] (!%p976_p9)  ;;  %804 = vst [vmem:[%s1538_s17 + $0x40] sm:$0xff] (!%p976_p9), %v788_v2  ;;  %v792_v12 = vmax.f32 (!%p976_p9), %v776_v9, 0.0 }
 0x187   : > { %803 = vst [vmem:[%s1538_s17 + $0x38] sm:$0xff] %v787_v1  ;;  %v793_v13 = vmax.f32 %v777_v10, 0.0  ;;  %v794_v14 = vmax.f32 %v778_v11, 0.0  ;;  %v779_v15 = vld [vmem:[%s1538_s17 + $0x78] sm:$0xff]  ;;  %805 = vst [vmem:[%s1538_s17 + $0x48] sm:$0xff] %v789_v6 }
 0x188   : > { %801 = vst [vmem:[%s1538_s17 + $0x28] sm:$0xff] %v785_v60  ;;  %802 = vst [vmem:[%s1538_s17 + $0x30] sm:$0xff] %v786_v0  ;;  %v795_v16 = vmax.f32 %v779_v15, 0.0 }
 0x189   : > { %806 = vst [vmem:[%s1538_s17 + $0x50] sm:$0xff] %v790_v7  ;;  %807 = vst [vmem:[%s1538_s17 + $0x58] sm:$0xff] %v791_v8 }
 0x18a   : > { %808 = vst [vmem:[%s1538_s17 + $0x60] sm:$0xff] %v792_v12  ;;  %809 = vst [vmem:[%s1538_s17 + $0x68] sm:$0xff] %v793_v13 }
 0x18b   : > { %810 = vst [vmem:[%s1538_s17 + $0x70] sm:$0xff] %v794_v14  ;;  %811 = vst [vmem:[%s1538_s17 + $0x78] sm:$0xff] %v795_v16 }
 0x18c PF: > { %s978_s19 = sshll.u32 %s1282_s20, 7  ;;  %s828_s24 = sshll.u32 %s1538_s17, 4  ;;  %s1653_s24 = int_to_ptr.vmem [resolvable:$true] %s828_s24 }
 0x18d   : > { %s1650_s29 = scalar_lea.hbm %s1724_s3, %s978_s19  ;;  %s1657_s15 = scalar_lea.sflag [#allocation5], %s430_s8 }
 0x18e   : > { %s1168_s4 = scalar_lea.vmem %s1653_s24, 2048  ;;  %s1296_s20 = smov [#allocation4]  }
 0x18f   : > { %p1169_p10 = scmp.ne.s32.totalorder %s1653_s24, %s1168_s4  ;;  %s1172_s25 = sshll.u32 %s1296_s20, 4  ;;  %s1173_s25 = int_to_ptr.vmem [resolvable:$false] %s1172_s25 }
 0x190   : > { %s1174_s6 = scalar_lea.vmem %s1173_s25, 4096  ;;  %p1175_p13 = scmp.lt.s32.totalorder %s1653_s24, %s1173_s25 }
 0x191   : > { %p1170_p11 = pnand %p1169_p10, %p1422_p0  ;;  %p1176_p2 = scmp.lt.s32.totalorder %s1174_s6, %s1168_s4 }
 0x193   : > { %p1171_p12 = pneg %p1170_p11  ;;  %p1177_p3 = por %p1176_p2, %p1175_p13 }
 0x195   : > { %p1178_p4 = pnand %p1177_p3, %p1171_p12 }
 0x197   : > { %1181 = shalt.err (!%p1178_p4)
}
 0x198   : > { %s1182_s8 = scalar_lea.hbm %s1650_s29, 2048  ;;  %s1186_s0 = scalar_lea.hbm %s1724_s3, 4096 }
 0x199   : > { %p1183_p5 = scmp.ne.s32.totalorder %s1650_s29, %s1182_s8  ;;  %p1187_p8 = scmp.lt.u32.totalorder %s1650_s29, %s1724_s3 }
 0x19a   : > { %p1188_p9 = scmp.lt.u32.totalorder %s1186_s0, %s1182_s8  ;;  %p1190_p11 = scmp.lt.u32.totalorder %s1182_s8, %s1650_s29 }
 0x19b   : > { %p1184_p6 = pnand %p1183_p5, %p1422_p0 }
 0x19c   : > { %p1189_p10 = por %p1188_p9, %p1187_p8 }
 0x19d   : > { %p1185_p7 = pneg %p1184_p6 }
 0x19e   : > { %p1191_p12 = por %p1190_p11, %p1189_p10 }
 0x1a0   : > { %p1192_p13 = pnand %p1191_p12, %p1185_p7 }
 0x1a2   : > { %1195 = shalt.err (!%p1192_p13)
}
 0x1a3   : > { %s1297_s26 = smov 128   ;;  %s1298_s9 = smov 256  }
 0x1a4   : > { %s1299_s4 = smov 8  }
 0x1a5   : > { %1046 = dma.vmem_to_hbm [thread:$0]  (%p1422_p0), %s1653_s24, 2048, %s1650_s29, %s1657_s15, %s1297_s26, %s1298_s9, %s1299_s4  }
 0x1a6 PF: > { %p1052_p2 = scmp.ge.s32.totalorder %s1294_s23, 2  ;;  %s843_s20 = sand.u32 1, %s1250_s12  }
 0x1a7   : > { %s844_s25 = scalar_lea.sflag [#allocation5], %s843_s20 }
 0x1a8   : > { %p1049_p3 = pnand %p1052_p2, %p1426_p1 }
 0x1aa   : > { %1245 = dma.done.wait (!%p1049_p3), %s844_s25, 2048  }
 0x1ab   : > { %1247 = vsyncadd (!%p1049_p3), %s844_s25, 4294965248  ;;  %s16_s23 = sadd.s32 1, %s1294_s23   ;;  %s1735_s28 = sld [smem:[#allocation7_spill]] }
 0x1ac   : > { %p13_p4 = scmp.ge.s32.totalorder %s16_s23, 6   ;;  %s1736_s29 = sld [smem:[#allocation8_spill]] }
 0x1ad   : > { %s1737_s12 = smov %s1254_s13  ;;  %s1738_s13 = smov %s1258_s14 }
 0x1ae   : > { %s1739_s14 = smov %s1413_s10  ;;  %s1740_s15 = smov %s1266_s16 }
 0x1af   : > { %s1741_s16 = smov %s1416_s11  ;;  %s1742_s17 = smov %s1274_s18 }
 0x1b0   : > { %s1743_s18 = smov %s1403_s5  ;;  %s1744_s19 = smov %s1286_s21 }
 0x1b1   : > { %s1745_s20 = smov %s1290_s22  ;;  %s1746_s21 = smov %s1735_s28 }
 0x1b2   : > { %s1747_s22 = smov %s1736_s29  ;;  %15 = sbr.rel (!%p13_p4) target bundleno = 9 (0x9), region = 177 }
 0x1b9   :  { %849 = vsyncpa [#allocation5], 1 }
 0x1ba   :  { %851 = vsyncpa [#allocation5 + $0x1], 1 }

</bundles_post_ra>
